<compile_context>
chip_gen: v7x
topology: tpu7x:2x2x1
jax: 0.10.0
libtpu: 0.0.40
codegen_flags: <defaults>
</compile_context>

<pallas_src>
import jax
import jax.numpy as jnp
from jax.experimental import pallas as pl
from jax.experimental.pallas import tpu as pltpu

LN_EPS = 1e-5


def _round_up(x, m):
    return ((x + m - 1) // m) * m


def bert_embedding_kernel(tok_ids_ref, seg_ids_ref, pos_ids_ref,   # SMEM (scalar prefetch)
                          tok_tab_ref, pos_tab_ref, seg_tab_ref,   # VMEM tables
                          gamma_ref, beta_ref,                     # VMEM LN params (1, D)
                          out_ref):                                # VMEM output tile (TM, D)
    tm = out_ref.shape[0]
    base = pl.program_id(0) * tm

    # --- row gather: out[r, :] = tok_tab[tok_id] + pos_tab[pos_id] + seg_tab[seg_id]
    def gather_row(r, carry):
        g = base + r
        tid = tok_ids_ref[g]          # scalar reads from SMEM
        pid = pos_ids_ref[g]
        sid = seg_ids_ref[g]
        row = (tok_tab_ref[pl.ds(tid, 1), :]
               + pos_tab_ref[pl.ds(pid, 1), :]
               + seg_tab_ref[pl.ds(sid, 1), :])          # (1, D) f32
        out_ref[pl.ds(r, 1), :] = row
        return carry

    jax.lax.fori_loop(0, tm, gather_row, 0)

    # --- fused LayerNorm over the hidden dim D (vectorized over the whole tile)
    emb = out_ref[...]                                   # (TM, D) f32
    mean = jnp.mean(emb, axis=-1, keepdims=True)
    centered = emb - mean
    var = jnp.mean(centered * centered, axis=-1, keepdims=True)
    inv = jax.lax.rsqrt(var + LN_EPS)
    normed = centered * inv * gamma_ref[...] + beta_ref[...]

    # Dropout: eval-mode identity.
    out_ref[...] = normed.astype(out_ref.dtype)


def bert_embedding(x_ids, seg_ids, tok_tab, pos_tab, seg_tab, gamma, beta,
                   *, row_tile=256):
    B, S = x_ids.shape
    V, D = tok_tab.shape
    NSEG = seg_tab.shape[0]
    N = B * S

    # Flatten (B, S) -> rows; build per-row id vectors for SMEM scalar prefetch.
    tok_flat = x_ids.astype(jnp.int32).reshape(N)
    seg_flat = seg_ids.astype(jnp.int32).reshape(N)
    pos_flat = jnp.tile(jnp.arange(S, dtype=jnp.int32), B)        # (N,)

    # Row tile: lane-dense (TM, D) output blocks, TM multiple of 8.
    tm = min(row_tile, _round_up(N, 8))
    n_pad = _round_up(N, tm)
    if n_pad != N:
        pad = n_pad - N
        tok_flat = jnp.pad(tok_flat, (0, pad))   # padded rows use id 0 (harmless)
        seg_flat = jnp.pad(seg_flat, (0, pad))
        pos_flat = jnp.pad(pos_flat, (0, pad))

    pos_slice = pos_tab[:S]                      # only positions [0, S) are used
    gamma2 = gamma.reshape(1, D)
    beta2 = beta.reshape(1, D)

    grid = (n_pad // tm,)

    grid_spec = pltpu.PrefetchScalarGridSpec(
        num_scalar_prefetch=3,                   # token ids, segment ids, position ids
        grid=grid,
        in_specs=[
            pl.BlockSpec((V, D), lambda i, *_: (0, 0)),      # token table (VMEM resident)
            pl.BlockSpec((S, D), lambda i, *_: (0, 0)),      # position table (sliced)
            pl.BlockSpec((NSEG, D), lambda i, *_: (0, 0)),   # segment table
            pl.BlockSpec((1, D), lambda i, *_: (0, 0)),      # LN gamma
            pl.BlockSpec((1, D), lambda i, *_: (0, 0)),      # LN beta
        ],
        out_specs=pl.BlockSpec((tm, D), lambda i, *_: (i, 0)),
    )

    # VMEM budget: tables + LN params (single-buffered, constant block index)
    # plus double-buffered output tiles; add margin, keep within scoped limits.
    table_bytes = 4 * D * (V + S + NSEG + 2)
    out_bytes = 2 * 4 * tm * D
    vmem_limit = int(min(max(2 * (table_bytes + out_bytes), 16 * 1024 * 1024),
                         100 * 1024 * 1024))

    out = pl.pallas_call(
        bert_embedding_kernel,
        out_shape=jax.ShapeDtypeStruct((n_pad, D), jnp.float32),
        grid_spec=grid_spec,
        compiler_params=pltpu.CompilerParams(
            dimension_semantics=("parallel",),
            vmem_limit_bytes=vmem_limit),
    )(tok_flat, seg_flat, pos_flat, tok_tab, pos_slice, seg_tab, gamma2, beta2)

    return out[:N].reshape(B, S, D)


def _reference(x_ids, seg_ids, tok_tab, pos_tab, seg_tab, gamma, beta):
    S = x_ids.shape[1]
    tok = tok_tab[x_ids]
    pos = pos_tab[:S][None, :, :]
    seg = seg_tab[seg_ids]
    emb = tok + pos + seg
    mean = jnp.mean(emb, axis=-1, keepdims=True)
    var = jnp.mean((emb - mean) ** 2, axis=-1, keepdims=True)
    return (emb - mean) / jnp.sqrt(var + LN_EPS) * gamma + beta


if __name__ == "__main__":
    # Small shapes consistent with the module: vocab=64, d_model=32, max_len=16,
    # batch=2, seq=8, num segments=3.
    VOCAB, D_MODEL, MAX_LEN = 64, 32, 16
    B, S = 2, 8

    key = jax.random.PRNGKey(0)
    k_tok, k_pos, k_seg, k_x, k_s = jax.random.split(key, 5)

    tok_tab = jax.random.normal(k_tok, (VOCAB, D_MODEL), jnp.float32) * 0.02
    tok_tab = tok_tab.at[0].set(0.0)        # padding_idx=0 row is zero
    pos_tab = jax.random.normal(k_pos, (MAX_LEN, D_MODEL), jnp.float32) * 0.02
    seg_tab = jax.random.normal(k_seg, (3, D_MODEL), jnp.float32) * 0.02
    seg_tab = seg_tab.at[0].set(0.0)        # padding_idx=0 row is zero
    gamma = jnp.ones((D_MODEL,), jnp.float32)   # nn.LayerNorm default weight
    beta = jnp.zeros((D_MODEL,), jnp.float32)   # nn.LayerNorm default bias

    x_ids = jax.random.randint(k_x, (B, S), 0, VOCAB, dtype=jnp.int32)
    seg_ids = jax.random.randint(k_s, (B, S), 0, 3, dtype=jnp.int32)

    out = bert_embedding(x_ids, seg_ids, tok_tab, pos_tab, seg_tab, gamma, beta)
    out = jax.block_until_ready(out)

    ref = _reference(x_ids, seg_ids, tok_tab, pos_tab, seg_tab, gamma, beta)
    assert out.shape == (B, S, D_MODEL)
    assert jnp.allclose(out, ref, atol=1e-5, rtol=1e-5)

    print("KERNEL_OK")
</pallas_src>

<mosaic_0001>
module attributes {stable_mosaic.version = 11 : i64} {
  func.func @bert_embedding_kernel(%arg0: i32, %arg1: memref<16xi32, #tpu.memory_space<smem>>, %arg2: memref<16xi32, #tpu.memory_space<smem>>, %arg3: memref<16xi32, #tpu.memory_space<smem>>, %arg4: memref<64x32xf32, #tpu.memory_space<vmem>>, %arg5: memref<8x32xf32, #tpu.memory_space<vmem>>, %arg6: memref<3x32xf32, #tpu.memory_space<vmem>>, %arg7: memref<1x32xf32, #tpu.memory_space<vmem>>, %arg8: memref<1x32xf32, #tpu.memory_space<vmem>>, %arg9: memref<16x32xf32, #tpu.memory_space<vmem>>) attributes {dimension_semantics = [#tpu.dimension_semantics<parallel>], iteration_bounds = array<i64: 1>, scalar_prefetch = 3 : i64, scratch_operands = 0 : i64, tpu.core_type = #tpu.core_type<tc>, window_params = [{pipeline_mode = #tpu.pipeline_mode<synchronous>, transform_indices = @transform_0, window_bounds = array<i64: 64, 32>}, {pipeline_mode = #tpu.pipeline_mode<synchronous>, transform_indices = @transform_1, window_bounds = array<i64: 8, 32>}, {pipeline_mode = #tpu.pipeline_mode<synchronous>, transform_indices = @transform_2, window_bounds = array<i64: 3, 32>}, {pipeline_mode = #tpu.pipeline_mode<synchronous>, transform_indices = @transform_3, window_bounds = array<i64: 1, 32>}, {pipeline_mode = #tpu.pipeline_mode<synchronous>, transform_indices = @transform_4, window_bounds = array<i64: 1, 32>}, {transform_indices = @transform_5, window_bounds = array<i64: 16, 32>}]} {
    %c16_i32 = arith.constant 16 : i32
    %0 = arith.muli %arg0, %c16_i32 : i32
    %c0_i32 = arith.constant 0 : i32
    %c16_i32_0 = arith.constant 16 : i32
    %1 = arith.addi %c0_i32, %c16_i32_0 : i32
    %c1_i32 = arith.constant 1 : i32
    scf.for %arg10 = %c0_i32 to %1 step %c1_i32  : i32 {
      %26 = arith.addi %0, %arg10 : i32
      %27 = arith.index_cast %26 : i32 to index
      %28 = memref.load %arg1[%27] : memref<16xi32, #tpu.memory_space<smem>>
      %29 = arith.index_cast %26 : i32 to index
      %30 = memref.load %arg3[%29] : memref<16xi32, #tpu.memory_space<smem>>
      %31 = arith.index_cast %26 : i32 to index
      %32 = memref.load %arg2[%31] : memref<16xi32, #tpu.memory_space<smem>>
      %33 = arith.index_cast %28 : i32 to index
      %c0_13 = arith.constant 0 : index
      %34 = vector.load %arg4[%33, %c0_13] : memref<64x32xf32, #tpu.memory_space<vmem>>, vector<1x32xf32>
      %35 = arith.index_cast %30 : i32 to index
      %c0_14 = arith.constant 0 : index
      %36 = vector.load %arg5[%35, %c0_14] : memref<8x32xf32, #tpu.memory_space<vmem>>, vector<1x32xf32>
      %37 = arith.addf %34, %36 : vector<1x32xf32>
      %38 = arith.index_cast %32 : i32 to index
      %c0_15 = arith.constant 0 : index
      %39 = vector.load %arg6[%38, %c0_15] : memref<3x32xf32, #tpu.memory_space<vmem>>, vector<1x32xf32>
      %40 = arith.addf %37, %39 : vector<1x32xf32>
      %41 = arith.index_cast %arg10 : i32 to index
      %c0_16 = arith.constant 0 : index
      %42 = vector.load %arg9[%41, %c0_16] : memref<16x32xf32, #tpu.memory_space<vmem>>, vector<1x32xf32>
      tpu.vector_store %arg9[%41, %c0_16], %40 {strides = array<i32>} : memref<16x32xf32, #tpu.memory_space<vmem>>, vector<1x32xf32>,
    }
    %c16_i32_1 = arith.constant 16 : i32
    %c0 = arith.constant 0 : index
    %c0_2 = arith.constant 0 : index
    %2 = vector.load %arg9[%c0, %c0_2] : memref<16x32xf32, #tpu.memory_space<vmem>>, vector<16x32xf32>
    %cst = arith.constant dense<0.000000e+00> : vector<16xf32>
    %3 = vector.multi_reduction <add>, %2, %cst [1] : vector<16x32xf32> to vector<16xf32>
    %4 = vector.shape_cast %3 : vector<16xf32> to vector<16x1xf32>
    %cst_3 = arith.constant 3.200000e+01 : f32
    %5 = vector.broadcast %cst_3 : f32 to vector<16x1xf32>
    %6 = arith.divf %4, %5 : vector<16x1xf32>
    %7 = vector.broadcast %6 : vector<16x1xf32> to vector<16x32xf32>
    %8 = arith.subf %2, %7 : vector<16x32xf32>
    %9 = arith.mulf %8, %8 : vector<16x32xf32>
    %cst_4 = arith.constant dense<0.000000e+00> : vector<16xf32>
    %10 = vector.multi_reduction <add>, %9, %cst_4 [1] : vector<16x32xf32> to vector<16xf32>
    %11 = vector.shape_cast %10 : vector<16xf32> to vector<16x1xf32>
    %cst_5 = arith.constant 3.200000e+01 : f32
    %12 = vector.broadcast %cst_5 : f32 to vector<16x1xf32>
    %13 = arith.divf %11, %12 : vector<16x1xf32>
    %cst_6 = arith.constant 9.99999974E-6 : f32
    %14 = vector.broadcast %cst_6 : f32 to vector<16x1xf32>
    %15 = arith.addf %13, %14 : vector<16x1xf32>
    %16 = math.rsqrt %15 : vector<16x1xf32>
    %17 = vector.broadcast %16 : vector<16x1xf32> to vector<16x32xf32>
    %18 = arith.mulf %8, %17 : vector<16x32xf32>
    %c0_7 = arith.constant 0 : index
    %c0_8 = arith.constant 0 : index
    %19 = vector.load %arg7[%c0_7, %c0_8] : memref<1x32xf32, #tpu.memory_space<vmem>>, vector<1x32xf32>
    %20 = vector.broadcast %19 : vector<1x32xf32> to vector<16x32xf32>
    %21 = arith.mulf %18, %20 : vector<16x32xf32>
    %c0_9 = arith.constant 0 : index
    %c0_10 = arith.constant 0 : index
    %22 = vector.load %arg8[%c0_9, %c0_10] : memref<1x32xf32, #tpu.memory_space<vmem>>, vector<1x32xf32>
    %23 = vector.broadcast %22 : vector<1x32xf32> to vector<16x32xf32>
    %24 = arith.addf %21, %23 : vector<16x32xf32>
    %c0_11 = arith.constant 0 : index
    %c0_12 = arith.constant 0 : index
    %25 = vector.load %arg9[%c0_11, %c0_12] : memref<16x32xf32, #tpu.memory_space<vmem>>, vector<16x32xf32>
    tpu.vector_store %arg9[%c0_11, %c0_12], %24 {strides = array<i32>} : memref<16x32xf32, #tpu.memory_space<vmem>>, vector<16x32xf32>,
    return
  }
  func.func @transform_0(%arg0: i32, %arg1: memref<16xi32, #tpu.memory_space<smem>>, %arg2: memref<16xi32, #tpu.memory_space<smem>>, %arg3: memref<16xi32, #tpu.memory_space<smem>>) -> (i32, i32) {
    %c0_i32 = arith.constant 0 : i32
    %c0_i32_0 = arith.constant 0 : i32
    %c0_i32_1 = arith.constant 0 : i32
    return %c0_i32, %c0_i32_0 : i32, i32
  }
  func.func @transform_1(%arg0: i32, %arg1: memref<16xi32, #tpu.memory_space<smem>>, %arg2: memref<16xi32, #tpu.memory_space<smem>>, %arg3: memref<16xi32, #tpu.memory_space<smem>>) -> (i32, i32) {
    %c0_i32 = arith.constant 0 : i32
    %c0_i32_0 = arith.constant 0 : i32
    %c0_i32_1 = arith.constant 0 : i32
    return %c0_i32, %c0_i32_0 : i32, i32
  }
  func.func @transform_2(%arg0: i32, %arg1: memref<16xi32, #tpu.memory_space<smem>>, %arg2: memref<16xi32, #tpu.memory_space<smem>>, %arg3: memref<16xi32, #tpu.memory_space<smem>>) -> (i32, i32) {
    %c0_i32 = arith.constant 0 : i32
    %c0_i32_0 = arith.constant 0 : i32
    %c0_i32_1 = arith.constant 0 : i32
    return %c0_i32, %c0_i32_0 : i32, i32
  }
  func.func @transform_3(%arg0: i32, %arg1: memref<16xi32, #tpu.memory_space<smem>>, %arg2: memref<16xi32, #tpu.memory_space<smem>>, %arg3: memref<16xi32, #tpu.memory_space<smem>>) -> (i32, i32) {
    %c0_i32 = arith.constant 0 : i32
    %c0_i32_0 = arith.constant 0 : i32
    %c0_i32_1 = arith.constant 0 : i32
    return %c0_i32, %c0_i32_0 : i32, i32
  }
  func.func @transform_4(%arg0: i32, %arg1: memref<16xi32, #tpu.memory_space<smem>>, %arg2: memref<16xi32, #tpu.memory_space<smem>>, %arg3: memref<16xi32, #tpu.memory_space<smem>>) -> (i32, i32) {
    %c0_i32 = arith.constant 0 : i32
    %c0_i32_0 = arith.constant 0 : i32
    %c0_i32_1 = arith.constant 0 : i32
    return %c0_i32, %c0_i32_0 : i32, i32
  }
  func.func @transform_5(%arg0: i32, %arg1: memref<16xi32, #tpu.memory_space<smem>>, %arg2: memref<16xi32, #tpu.memory_space<smem>>, %arg3: memref<16xi32, #tpu.memory_space<smem>>) -> (i32, i32) {
    %c0_i32 = arith.constant 0 : i32
    %c0_i32_0 = arith.constant 0 : i32
    return %arg0, %c0_i32 : i32, i32
  }
}

</mosaic_0001>

<bundles_post_ra>
// kernel: tpu_custom_call.1
= control target key start
LH: loop header
LB: loop body
LE: loop exit
PB: predicated region body
PF: predicated region fallthrough
CT: control target
= control target key end

     0   :  { %s318_s0 = inlined_call_operand.vmem [shape: s32[16], index: 0, kind: input, shape index: {}]   ;;  %s319_s3 = inlined_call_operand.vmem [shape: f32[64,32], index: 3, kind: input, shape index: {}]   ;;  %s320_s4 = inlined_call_operand.vmem [shape: f32[8,32], index: 4, kind: input, shape index: {}]   ;;  %s321_s5 = inlined_call_operand.vmem [shape: f32[3,32], index: 5, kind: input, shape index: {}]   ;;  %s322_s6 = inlined_call_operand.vmem [shape: f32[1,32], index: 6, kind: input, shape index: {}]   ;;  %s323_s7 = inlined_call_operand.vmem [shape: f32[1,32], index: 7, kind: input, shape index: {}]   ;;  %s324_s8 = inlined_call_operand.hbm [shape: f32[16,32], index: 8, kind: output, shape index: {}]   ;;  %s325_s1 = inlined_call_operand.vmem [shape: s32[16], index: 1, kind: input, shape index: {}]   ;;  %s326_s2 = inlined_call_operand.vmem [shape: s32[16], index: 2, kind: input, shape index: {}]  }
   0x1   :  { %s13_s29 = sshll.u32 %s318_s0, 4  ;;  %s17_s10 = sshll.u32 %s325_s1, 4  ;;  %s14_s29 = int_to_ptr.vmem [resolvable:$true] %s13_s29  ;;  %s18_s10 = int_to_ptr.vmem [resolvable:$true] %s17_s10 }
   0x2   :  { %s155_s11 = scalar_lea.vmem %s14_s29, 16  ;;  %p160_p1 = scmp.lt.s32.totalorder %s14_s29, %s14_s29 }
   0x3   :  { %p156_p0 = scmp.ne.s32.totalorder %s14_s29, %s155_s11  ;;  %p161_p2 = scmp.lt.s32.totalorder %s155_s11, %s155_s11 }
   0x5   :  { %p162_p3 = por %p161_p2, %p160_p1 }
   0x7   :  { %p163_p4 = pnand %p162_p3, %p156_p0 }
   0x9   :  { %166 = shalt.err (!%p163_p4)  }
   0xa   :  { %s225_s12 = smov [#allocation3]   ;;  %s167_s13 = scalar_lea.vmem %s18_s10, 16 }
   0xb   :  { %16 = dma.vmem_to_smem %s14_s29, 16, %s225_s12, [#allocation2] }
   0xc   :  { %p168_p5 = scmp.ne.s32.totalorder %s18_s10, %s167_s13  ;;  %p172_p6 = scmp.lt.s32.totalorder %s18_s10, %s18_s10 }
   0xd   :  { %p173_p7 = scmp.lt.s32.totalorder %s167_s13, %s167_s13 }
   0xf   :  { %p174_p8 = por %p173_p7, %p172_p6 }
  0x11   :  { %p175_p9 = pnand %p174_p8, %p168_p5 }
  0x13   :  { %178 = shalt.err (!%p175_p9)  }
  0x14   :  { %s226_s0 = smov [#allocation4]   ;;  %s21_s15 = sshll.u32 %s326_s2, 4  ;;  %s22_s15 = int_to_ptr.vmem [resolvable:$true] %s21_s15 }
  0x15   :  { %20 = dma.vmem_to_smem %s18_s10, 16, %s226_s0, [#allocation2] }
  0x16   :  { %s179_s16 = scalar_lea.vmem %s22_s15, 16  ;;  %p184_p11 = scmp.lt.s32.totalorder %s22_s15, %s22_s15 }
  0x17   :  { %p180_p10 = scmp.ne.s32.totalorder %s22_s15, %s179_s16  ;;  %p185_p12 = scmp.lt.s32.totalorder %s179_s16, %s179_s16 }
  0x19   :  { %p186_p13 = por %p185_p12, %p184_p11 }
  0x1b   :  { %p187_p0 = pnand %p186_p13, %p180_p10 }
  0x1d   :  { %190 = shalt.err (!%p187_p0)  }
  0x1e   :  { %s227_s17 = smov [#allocation5]  }
  0x1f   :  { %24 = dma.vmem_to_smem %s22_s15, 16, %s227_s17, [#allocation2] }
  0x20   :  { %217 = dma.done.wait [#allocation2], 48 }
  0x21   :  { %218 = vsyncadd [#allocation2], 4294967248 }
  0x22   :  { %26 = sfence }
  0x23   :  { %27 = vsyncpa [#allocation7], 0  ;;  %s221_s18 = smov 0  }
  0x24 LB: > { %s46_s19 = sld [smem:[#allocation3 + %s223_s18]]  ;;  %vm58_vm0 = vcmask 253952   ;;  %s57_s30 = scalar_lea.vmem [#allocation6], %s223_s18  ;;  %s223_s18 = sphi %s221_s18, %s44_s18  }
  0x25   : > { %s47_s2 = sld [smem:[#allocation5 + %s223_s18]] }
  0x26   : > { %s48_s20 = sld [smem:[#allocation4 + %s223_s18]]  ;;  %s44_s18 = sadd.s32 1, %s223_s18  }
  0x27   : > { %p41_p1 = scmp.ge.s32.totalorder %s44_s18, 16  }
  0x28   :  { %vm62_vm1 = vcmask (%p41_p1), 261120   ;;  %v135_v26 = vld [vmem:[%s322_s6] ss:$0 sm:$0xff] (%p41_p1)  ;;  %s228_s10 = smov (%p41_p1), [#allocation6]  }
  0x29   :  { %v136_v28 = vld [vmem:[%s323_s7] ss:$0 sm:$0xff] (%p41_p1)  ;;  %s115_s11 = sshll.u32 (%p41_p1), %s228_s10, 4  ;;  %s116_s11 = int_to_ptr.vmem [resolvable:$true] %s115_s11 }
  0x2a   : > { %s49_s23 = scalar_lea.vmem %s319_s3, %s46_s19  ;;  %s191_s12 = scalar_lea.vmem (%p41_p1), %s116_s11, 256 }
  0x2b   : > { %s51_s26 = scalar_lea.vmem %s320_s4, %s47_s2  ;;  %v50_v0 = vld [vmem:[%s49_s23] sm:$0x1]  ;;  %43 = sbr.rel (!%p41_p1) target bundleno = 36 (0x24), region = 51 }
  0x2c   : > { %v52_v1 = vld [vmem:[%s51_s26] sm:$0x1]  ;;  %s54_s29 = scalar_lea.vmem %s321_s5, %s48_s20  ;;  %p192_p2 = scmp.ne.s32.totalorder (%p41_p1), %s116_s11, %s191_s12 }
  0x2d   : > { %v53_v2 = vadd.f32 %v52_v1, %v50_v0  ;;  %v55_v3 = vld [vmem:[%s54_s29] sm:$0x1]  ;;  %p196_p3 = scmp.lt.s32.totalorder (%p41_p1), %s116_s11, %s116_s11  ;;  %p197_p4 = scmp.lt.s32.totalorder (%p41_p1), %s191_s12, %s191_s12 }
  0x2f   : > { %v56_v4 = vadd.f32 %v55_v3, %v53_v2  ;;  %p198_p5 = por (%p41_p1), %p197_p4, %p196_p3 }
  0x31   : > { %59 = vst.msk [vmem:[%s57_s30] sm:$0x1] %vm58_vm0, %v56_v4  ;;  %p199_p6 = pnand (%p41_p1), %p198_p5, %p192_p2 }
  0x38   :  { %v60_v5 = vld [vmem:[#allocation6] sm:$0xff]  ;;  %v61_v6 = vld [vmem:[#allocation6 + $0x8] sm:$0xff] }
  0x39   :  { %v63_v7 = vsel %vm62_vm1, %v60_v5, 0.0  ;;  %v66_v8 = vsel %vm62_vm1, %v61_v6, 0.0 }
  0x3a   :  { %64 = vadd.xlane.f32.xlu0 %v63_v7 }
  0x3e   :  { %67 = vadd.xlane.f32.xlu0 %v66_v8 }
  0xc7   :  { %v65_v9 = vpop.xlane.xlu0 %64 }
  0xc8   :  { %v70_v10 = vmul.f32 0.03125, %v65_v9 }
  0xca   :  { %v72_v11 = vsub.f32 %v60_v5, %v70_v10 }
  0xcb   :  { %v68_v12 = vpop.xlane.xlu0 %67 }
  0xcc   :  { %v71_v13 = vmul.f32 0.03125, %v68_v12  ;;  %v74_v14 = vmul.f32 %v72_v11, %v72_v11 }
  0xce   :  { %v73_v15 = vsub.f32 %v61_v6, %v71_v13  ;;  %v76_v16 = vsel %vm62_vm1, %v74_v14, 0.0 }
  0xcf   :  { %77 = vadd.xlane.f32.xlu1 %v76_v16 }
  0xd0   :  { %v75_v17 = vmul.f32 %v73_v15, %v73_v15 }
  0xd2   :  { %v79_v18 = vsel %vm62_vm1, %v75_v17, 0.0 }
  0xd3   :  { %80 = vadd.xlane.f32.xlu1 %v79_v18 }
 0x15c   :  { %v78_v19 = vpop.xlane.xlu1 %77 }
 0x15d   :  { %v82_v20 = vmul.f32 0.03125, %v78_v19 }
 0x15f   :  { %v84_v21 = vadd.f32 1e-05, %v82_v20 }
 0x160   :  { %v81_v22 = vpop.xlane.xlu1 %80 }
 0x161   :  { %151 = vrsqrt.f32 %v84_v21  ;;  %v83_v23 = vmul.f32 0.03125, %v81_v22 }
 0x163   :  { %v85_v24 = vadd.f32 1e-05, %v83_v23 }
 0x165   :  { %153 = vrsqrt.f32 %v85_v24 }
 0x16b   :  { %v152_v25 = vpop.eup %151 }
 0x16c   :  { %v88_v27 = vmul.f32 %v152_v25, %v72_v11 }
 0x16e   :  { %v97_v29 = vmul.f32 %v135_v26, %v88_v27 }
 0x16f   :  { %v154_v30 = vpop.eup %153 }
 0x170   :  { %v89_v31 = vmul.f32 %v154_v30, %v73_v15  ;;  %v106_v32 = vadd.f32 %v136_v28, %v97_v29 }
 0x172   :  { %v98_v33 = vmul.f32 %v135_v26, %v89_v31  ;;  %108 = vst.msk [vmem:[#allocation6] sm:$0xff] %vm62_vm1, %v106_v32 }
 0x174   :  { %v107_v34 = vadd.f32 %v136_v28, %v98_v33 }
 0x176   :  { %109 = vst.msk [vmem:[#allocation6 + $0x8] sm:$0xff] %vm62_vm1, %v107_v34 }
 0x177   :  { %202 = shalt.err (!%p199_p6)
}
 0x178   :  { %s203_s13 = scalar_lea.hbm %s324_s8, 256 }
 0x179   :  { %p204_p7 = scmp.ne.s32.totalorder %s324_s8, %s203_s13  ;;  %p207_p8 = scmp.lt.u32.totalorder %s203_s13, %s324_s8 }
 0x17b   :  { %p209_p9 = pnand %p207_p8, %p204_p7 }
 0x17d   :  { %212 = shalt.err (!%p209_p9)
}
 0x17e   :  { %s229_s16 = smov 128   ;;  %s230_s17 = smov 8  }
 0x17f   :  { %121 = dma.vmem_to_hbm [thread:$0]  %s116_s11, 256, %s324_s8, [#allocation7], %s229_s16, %s229_s16, %s230_s17  }
 0x180   :  { %219 = dma.done.wait [#allocation7], 256  }
 0x181   :  { %220 = vsyncadd [#allocation7], 4294967040 }
 0x182   :  { %125 = vsyncpa [#allocation7], 1 }

</bundles_post_ra>
